<compile_context>
chip_gen: v7x
topology: tpu7x:2x2x1
jax: 0.10.0
libtpu: 0.0.40
codegen_flags: <defaults>
</compile_context>

<pallas_src>
import jax
import jax.numpy as jnp
from jax.experimental import pallas as pl
from jax.experimental.pallas import tpu as pltpu


def encoder_kernel(x_ref, w1_ref, b1_ref, w2_ref, b2_ref, o_ref):
    # In-kernel cast to bf16 (no-op if x already arrives as bf16).
    x = x_ref[...].astype(jnp.bfloat16)
    # fc1 + ReLU  (bf16 operands, f32 accumulation on the MXU)
    h1 = jnp.dot(x, w1_ref[...], preferred_element_type=jnp.float32)
    h1 = jnp.maximum(h1 + b1_ref[...], 0.0)
    # fc2 + ReLU
    h2 = jnp.dot(h1.astype(jnp.bfloat16), w2_ref[...],
                 preferred_element_type=jnp.float32)
    h2 = jnp.maximum(h2 + b2_ref[...], 0.0)
    o_ref[...] = h2.astype(o_ref.dtype)


def prepare_params(params):
    """One-time parameter prep (do NOT call per forward): bf16 weights, f32 biases."""
    w1, b1, w2, b2 = params
    return (
        w1.astype(jnp.bfloat16),                       # (784, hidden)
        b1.reshape(1, -1).astype(jnp.float32),         # (1, hidden)
        w2.astype(jnp.bfloat16),                       # (hidden, hidden)
        b2.reshape(1, -1).astype(jnp.float32),         # (1, hidden)
    )


def encoder_forward(x, prepared_params, *, tb=1024, out_dtype=jnp.float32):
    """x: (B, C, 28, 28) or (B, 784) -> (B, hidden) in `out_dtype`."""
    w1_bf, b1_f, w2_bf, b2_f = prepared_params
    in_dim, hidden = w1_bf.shape
    B = x.shape[0]

    # Flatten (nn.Flatten equivalent). No dtype cast / no K padding here:
    # the kernel casts to bf16 itself and handles the 784 (non-128-multiple)
    # K dim as a full-extent block.
    xf = x.reshape(B, in_dim)

    # Batch tile selection:
    #  * large B: TB = tb (default 1024 -> ~6.5 MB VMEM, fits every generation;
    #    if you raise tb to 2048, also raise vmem_limit_bytes for v5e).
    #  * 16 <= B < tb: split into 2 grid steps so both v7x TensorCores are used.
    #  * tiny B: single tile rounded up to sublane multiple (8).
    if B >= tb:
        TB = tb
    elif B >= 16:
        TB = ((pl.cdiv(B, 2) + 7) // 8) * 8
    else:
        TB = ((B + 7) // 8) * 8

    Bp = pl.cdiv(B, TB) * TB
    if Bp != B:
        xf = jnp.pad(xf, ((0, Bp - B), (0, 0)))

    grid = (Bp // TB,)

    flops = 2 * Bp * (in_dim * hidden + hidden * hidden)
    bytes_accessed = (Bp * in_dim * xf.dtype.itemsize      # x (streamed once)
                      + in_dim * hidden * 2                # w1 (bf16)
                      + hidden * hidden * 2                # w2 (bf16)
                      + 2 * hidden * 4                     # biases (f32)
                      + Bp * hidden * jnp.dtype(out_dtype).itemsize)  # out

    out = pl.pallas_call(
        encoder_kernel,
        out_shape=jax.ShapeDtypeStruct((Bp, hidden), out_dtype),
        grid=grid,
        in_specs=[
            pl.BlockSpec((TB, in_dim), lambda i: (i, 0)),      # x tile streams
            pl.BlockSpec((in_dim, hidden), lambda i: (0, 0)),  # w1 resident
            pl.BlockSpec((1, hidden), lambda i: (0, 0)),       # b1 resident
            pl.BlockSpec((hidden, hidden), lambda i: (0, 0)),  # w2 resident
            pl.BlockSpec((1, hidden), lambda i: (0, 0)),       # b2 resident
        ],
        out_specs=pl.BlockSpec((TB, hidden), lambda i: (i, 0)),
        compiler_params=pltpu.CompilerParams(
            dimension_semantics=("parallel",)),
        cost_estimate=pl.CostEstimate(
            flops=flops, transcendentals=0, bytes_accessed=bytes_accessed),
    )(xf, w1_bf, b1_f, w2_bf, b2_f)

    return out[:B]


def init_params(key, in_channels=1, hidden_dim=256):
    """Deterministic synthetic parameters, shapes match the PyTorch module."""
    input_size = in_channels * 28 * 28
    k1, k2, k3, k4 = jax.random.split(key, 4)
    # Stored as (in_features, out_features) == PyTorch weight.T
    w1 = jax.random.normal(k1, (input_size, hidden_dim), jnp.float32) * 0.02
    b1 = jax.random.normal(k2, (1, hidden_dim), jnp.float32) * 0.02
    w2 = jax.random.normal(k3, (hidden_dim, hidden_dim), jnp.float32) * 0.02
    b2 = jax.random.normal(k4, (1, hidden_dim), jnp.float32) * 0.02
    return (w1, b1, w2, b2)


def encoder_reference(x, params):
    """Plain-JAX f32 reference (mirrors the PyTorch forward)."""
    w1, b1, w2, b2 = params
    xf = x.reshape(x.shape[0], -1).astype(jnp.float32)
    h = jnp.maximum(xf @ w1 + b1, 0.0)
    h = jnp.maximum(h @ w2 + b2, 0.0)
    return h


if __name__ == "__main__":
    key = jax.random.PRNGKey(0)
    kx, kp = jax.random.split(key)

    B, in_channels, hidden_dim = 8, 1, 256
    x = jax.random.normal(kx, (B, in_channels, 28, 28), jnp.float32)
    params = init_params(kp, in_channels=in_channels, hidden_dim=hidden_dim)

    # Parameters are cast/packed once here, not on every forward call.
    prepared = prepare_params(params)

    out = encoder_forward(x, prepared)
    out = jax.block_until_ready(out)

    ref = encoder_reference(x, params)
    assert out.shape == (B, hidden_dim), out.shape
    # bf16 matmul inputs with f32 accumulation -> loose-ish tolerance vs f32 ref.
    assert jnp.allclose(out, ref, atol=3e-2, rtol=3e-2), \
        float(jnp.max(jnp.abs(out - ref)))

    print("KERNEL_OK")
</pallas_src>

<mosaic_0001>
module attributes {stable_mosaic.version = 11 : i64} {
  func.func @encoder_kernel(%arg0: i32, %arg1: memref<8x784xf32, #tpu.memory_space<vmem>>, %arg2: memref<784x256xbf16, #tpu.memory_space<vmem>>, %arg3: memref<1x256xf32, #tpu.memory_space<vmem>>, %arg4: memref<256x256xbf16, #tpu.memory_space<vmem>>, %arg5: memref<1x256xf32, #tpu.memory_space<vmem>>, %arg6: memref<8x256xf32, #tpu.memory_space<vmem>>) attributes {dimension_semantics = [#tpu.dimension_semantics<parallel>], iteration_bounds = array<i64: 1>, scalar_prefetch = 0 : i64, scratch_operands = 0 : i64, tpu.core_type = #tpu.core_type<tc>, window_params = [{transform_indices = @transform_0, window_bounds = array<i64: 8, 784>}, {pipeline_mode = #tpu.pipeline_mode<synchronous>, transform_indices = @transform_1, window_bounds = array<i64: 784, 256>}, {pipeline_mode = #tpu.pipeline_mode<synchronous>, transform_indices = @transform_2, window_bounds = array<i64: 1, 256>}, {pipeline_mode = #tpu.pipeline_mode<synchronous>, transform_indices = @transform_3, window_bounds = array<i64: 256, 256>}, {pipeline_mode = #tpu.pipeline_mode<synchronous>, transform_indices = @transform_4, window_bounds = array<i64: 1, 256>}, {transform_indices = @transform_5, window_bounds = array<i64: 8, 256>}]} {
    %c0 = arith.constant 0 : index
    %c0_0 = arith.constant 0 : index
    %0 = vector.load %arg1[%c0, %c0_0] : memref<8x784xf32, #tpu.memory_space<vmem>>, vector<8x784xf32>
    %1 = arith.truncf %0 : vector<8x784xf32> to vector<8x784xbf16>
    %c0_1 = arith.constant 0 : index
    %c0_2 = arith.constant 0 : index
    %2 = vector.load %arg2[%c0_1, %c0_2] : memref<784x256xbf16, #tpu.memory_space<vmem>>, vector<784x256xbf16>
    %cst = arith.constant dense<0.000000e+00> : vector<8x256xf32>
    %3 = tpu.matmul %1, %2, %cst {dimension_numbers = #tpu.dot_dimension_numbers<[1], [0], [0], [1], [0, 0, 1, 1], [], []>} : vector<8x784xbf16>, vector<784x256xbf16>, vector<8x256xf32> -> vector<8x256xf32>
    %c0_3 = arith.constant 0 : index
    %c0_4 = arith.constant 0 : index
    %4 = vector.load %arg3[%c0_3, %c0_4] : memref<1x256xf32, #tpu.memory_space<vmem>>, vector<1x256xf32>
    %5 = vector.broadcast %4 : vector<1x256xf32> to vector<8x256xf32>
    %6 = arith.addf %3, %5 : vector<8x256xf32>
    %cst_5 = arith.constant 0.000000e+00 : f32
    %7 = vector.broadcast %cst_5 : f32 to vector<8x256xf32>
    %8 = arith.maximumf %6, %7 : vector<8x256xf32>
    %9 = arith.truncf %8 : vector<8x256xf32> to vector<8x256xbf16>
    %c0_6 = arith.constant 0 : index
    %c0_7 = arith.constant 0 : index
    %10 = vector.load %arg4[%c0_6, %c0_7] : memref<256x256xbf16, #tpu.memory_space<vmem>>, vector<256x256xbf16>
    %cst_8 = arith.constant dense<0.000000e+00> : vector<8x256xf32>
    %11 = tpu.matmul %9, %10, %cst_8 {dimension_numbers = #tpu.dot_dimension_numbers<[1], [0], [0], [1], [0, 0, 1, 1], [], []>} : vector<8x256xbf16>, vector<256x256xbf16>, vector<8x256xf32> -> vector<8x256xf32>
    %c0_9 = arith.constant 0 : index
    %c0_10 = arith.constant 0 : index
    %12 = vector.load %arg5[%c0_9, %c0_10] : memref<1x256xf32, #tpu.memory_space<vmem>>, vector<1x256xf32>
    %13 = vector.broadcast %12 : vector<1x256xf32> to vector<8x256xf32>
    %14 = arith.addf %11, %13 : vector<8x256xf32>
    %cst_11 = arith.constant 0.000000e+00 : f32
    %15 = vector.broadcast %cst_11 : f32 to vector<8x256xf32>
    %16 = arith.maximumf %14, %15 : vector<8x256xf32>
    %c0_12 = arith.constant 0 : index
    %c0_13 = arith.constant 0 : index
    %17 = vector.load %arg6[%c0_12, %c0_13] : memref<8x256xf32, #tpu.memory_space<vmem>>, vector<8x256xf32>
    tpu.vector_store %arg6[%c0_12, %c0_13], %16 {strides = array<i32>} : memref<8x256xf32, #tpu.memory_space<vmem>>, vector<8x256xf32>,
    return
  }
  func.func @transform_0(%arg0: i32) -> (i32, i32) {
    %c0_i32 = arith.constant 0 : i32
    %c0_i32_0 = arith.constant 0 : i32
    return %arg0, %c0_i32 : i32, i32
  }
  func.func @transform_1(%arg0: i32) -> (i32, i32) {
    %c0_i32 = arith.constant 0 : i32
    %c0_i32_0 = arith.constant 0 : i32
    %c0_i32_1 = arith.constant 0 : i32
    return %c0_i32, %c0_i32_0 : i32, i32
  }
  func.func @transform_2(%arg0: i32) -> (i32, i32) {
    %c0_i32 = arith.constant 0 : i32
    %c0_i32_0 = arith.constant 0 : i32
    %c0_i32_1 = arith.constant 0 : i32
    return %c0_i32, %c0_i32_0 : i32, i32
  }
  func.func @transform_3(%arg0: i32) -> (i32, i32) {
    %c0_i32 = arith.constant 0 : i32
    %c0_i32_0 = arith.constant 0 : i32
    %c0_i32_1 = arith.constant 0 : i32
    return %c0_i32, %c0_i32_0 : i32, i32
  }
  func.func @transform_4(%arg0: i32) -> (i32, i32) {
    %c0_i32 = arith.constant 0 : i32
    %c0_i32_0 = arith.constant 0 : i32
    %c0_i32_1 = arith.constant 0 : i32
    return %c0_i32, %c0_i32_0 : i32, i32
  }
  func.func @transform_5(%arg0: i32) -> (i32, i32) {
    %c0_i32 = arith.constant 0 : i32
    %c0_i32_0 = arith.constant 0 : i32
    return %arg0, %c0_i32 : i32, i32
  }
}

</mosaic_0001>

<bundles_post_ra>
// kernel: tpu_custom_call.1
= control target key start
LH: loop header
LB: loop body
LE: loop exit
PB: predicated region body
PF: predicated region fallthrough
CT: control target
= control target key end

     0   :  { %10 = vsyncpa [#allocation3], 0  ;;  %s1648_s0 = inlined_call_operand.hbm [shape: f32[8,784], index: 0, kind: input, shape index: {}]   ;;  %s1649_s1 = inlined_call_operand.hbm [shape: bf16[784,256], index: 1, kind: input, shape index: {}]   ;;  %s1650_s2 = inlined_call_operand.vmem [shape: f32[1,256], index: 2, kind: input, shape index: {}]   ;;  %s1651_s3 = inlined_call_operand.hbm [shape: bf16[256,256], index: 3, kind: input, shape index: {}]   ;;  %s1652_s4 = inlined_call_operand.vmem [shape: f32[1,256], index: 4, kind: input, shape index: {}]   ;;  %s1653_s5 = inlined_call_operand.hbm [shape: f32[8,256], index: 5, kind: output, shape index: {}]  }
   0x1   :  { %11 = vsyncpa [#allocation6], 0 }
   0x2   :  { %12 = vsyncpa [#allocation4], 0  ;;  %s1551_s18 = smov [#allocation5]   ;;  %s1457_s22 = scalar_lea.hbm %s1649_s1, 12544 }
   0x3   :  { %s28_s19 = sshll.u32 %s1551_s18, 4  ;;  %p1458_p0 = scmp.ne.s32.totalorder %s1649_s1, %s1457_s22  ;;  %s29_s19 = int_to_ptr.vmem [resolvable:$true] %s28_s19 }
   0x4   :  { %p1461_p1 = scmp.lt.u32.totalorder %s1457_s22, %s1649_s1 }
   0x6   :  { %p1463_p2 = pnand %p1461_p1, %p1458_p0 }
   0x8   :  { %1466 = shalt.err (!%p1463_p2)
}
   0x9   :  { %s1467_s27 = scalar_lea.vmem %s29_s19, 12544  ;;  %p1472_p4 = scmp.lt.s32.totalorder %s29_s19, %s29_s19 }
   0xa   :  { %p1468_p3 = scmp.ne.s32.totalorder %s29_s19, %s1467_s27  ;;  %p1473_p5 = scmp.lt.s32.totalorder %s1467_s27, %s1467_s27 }
   0xc   :  { %p1474_p6 = por %p1473_p5, %p1472_p4 }
   0xe   :  { %p1475_p7 = pnand %p1474_p6, %p1468_p3 }
  0x10   :  { %1478 = shalt.err (!%p1475_p7)
}
  0x11   :  { %s1552_s28 = smov 128   ;;  %s1553_s29 = smov 8  }
  0x12   :  { %34 = dma.hbm_to_vmem [thread:$0]  %s1649_s1, 12544, %s29_s19, [#allocation6], %s1552_s28, %s1552_s28, %s1553_s29  }
  0x13   :  { %s1554_s7 = smov [#allocation2]   ;;  %s1555_s9 = smov [#allocation7]  }
  0x14   :  { %s19_s8 = sshll.u32 %s1554_s7, 4  ;;  %s42_s10 = sshll.u32 %s1555_s9, 4  ;;  %s20_s8 = int_to_ptr.vmem [resolvable:$true] %s19_s8  ;;  %s43_s10 = int_to_ptr.vmem [resolvable:$true] %s42_s10 }
  0x15   :  { %s1479_s13 = scalar_lea.hbm %s1648_s0, 896 }
  0x16   :  { %p1480_p8 = scmp.ne.s32.totalorder %s1648_s0, %s1479_s13  ;;  %p1483_p9 = scmp.lt.u32.totalorder %s1479_s13, %s1648_s0 }
  0x18   :  { %p1485_p10 = pnand %p1483_p9, %p1480_p8 }
  0x1a   :  { %1488 = shalt.err (!%p1485_p10)
}
  0x1b   :  { %s1489_s1 = scalar_lea.vmem %s20_s8, 896  ;;  %p1494_p12 = scmp.lt.s32.totalorder %s20_s8, %s20_s8 }
  0x1c   :  { %p1490_p11 = scmp.ne.s32.totalorder %s20_s8, %s1489_s1  ;;  %p1495_p13 = scmp.lt.s32.totalorder %s1489_s1, %s1489_s1 }
  0x1e   :  { %p1496_p0 = por %p1495_p13, %p1494_p12 }
  0x20   :  { %p1497_p1 = pnand %p1496_p0, %p1490_p11 }
  0x22   :  { %1500 = shalt.err (!%p1497_p1)
}
  0x23   :  { %22 = dma.hbm_to_vmem [thread:$0]  %s1648_s0, 896, %s20_s8, [#allocation3]  }
  0x24   :  { %s1501_s22 = scalar_lea.hbm %s1651_s3, 4096 }
  0x25   :  { %p1502_p2 = scmp.ne.s32.totalorder %s1651_s3, %s1501_s22  ;;  %p1505_p3 = scmp.lt.u32.totalorder %s1501_s22, %s1651_s3 }
  0x27   :  { %p1507_p4 = pnand %p1505_p3, %p1502_p2 }
  0x29   :  { %1510 = shalt.err (!%p1507_p4)
}
  0x2a   :  { %s1511_s27 = scalar_lea.vmem %s43_s10, 4096  ;;  %p1516_p6 = scmp.lt.s32.totalorder %s43_s10, %s43_s10 }
  0x2b   :  { %p1512_p5 = scmp.ne.s32.totalorder %s43_s10, %s1511_s27  ;;  %p1517_p7 = scmp.lt.s32.totalorder %s1511_s27, %s1511_s27 }
  0x2d   :  { %p1518_p8 = por %p1517_p7, %p1516_p6 }
  0x2f   :  { %p1519_p9 = pnand %p1518_p8, %p1512_p5 }
  0x31   :  { %1522 = shalt.err (!%p1519_p9)
}
  0x32   :  { %48 = dma.hbm_to_vmem [thread:$0]  %s1651_s3, 4096, %s43_s10, [#allocation6], %s1552_s28, %s1552_s28, %s1553_s29  }
  0x33   :  { %1545 = dma.done.wait [#allocation3], 896  }
  0x34   :  { %1546 = vsyncadd [#allocation3], 4294966400 }
  0x35   :  { %1547 = dma.done.wait [#allocation6], 16640  }
  0x36   :  { %1548 = vsyncadd [#allocation6], 4294950656  ;;  %v1262_v0 = vld [vmem:[#allocation5 + $0x104] ss:$8 sps:$4 sm:$0xff]   ;;  %v1264_v1 = vld [vmem:[#allocation5 + $0x100] ss:$8 sps:$4 sm:$0xff]  }
  0x37   :  { %720 = vmatprep.subr.bf16.mxu0 %v1262_v0  ;;  %v1265_v2 = vld [vmem:[#allocation5 + $0x114] ss:$8 sps:$4 sm:$0xff]   ;;  %v1267_v3 = vld [vmem:[#allocation5 + $0x110] ss:$8 sps:$4 sm:$0xff]   ;;  %v1268_v4 = vld [vmem:[#allocation5 + $0x124] ss:$8 sps:$4 sm:$0xff]  }
  0x38   :  { %721 = vmatpush1.bf16.msra.mxu0 %v1264_v1  ;;  %v1270_v5 = vld [vmem:[#allocation5 + $0x120] ss:$8 sps:$4 sm:$0xff]   ;;  %v1271_v6 = vld [vmem:[#allocation5 + $0x134] ss:$8 sps:$4 sm:$0xff]   ;;  %v1273_v7 = vld [vmem:[#allocation5 + $0x130] ss:$8 sps:$4 sm:$0xff]  }
  0x39   :  { %722 = vmatprep.subr.bf16.mxu0 %v1265_v2  ;;  %v1274_v8 = vld [vmem:[#allocation5 + $0x144] ss:$8 sps:$4 sm:$0xff]   ;;  %v1276_v9 = vld [vmem:[#allocation5 + $0x140] ss:$8 sps:$4 sm:$0xff]   ;;  %v1277_v10 = vld [vmem:[#allocation5 + $0x154] ss:$8 sps:$4 sm:$0xff]  }
  0x3a   :  { %v1279_v11 = vld [vmem:[#allocation5 + $0x150] ss:$8 sps:$4 sm:$0xff]   ;;  %v1280_v12 = vld [vmem:[#allocation5 + $0x164] ss:$8 sps:$4 sm:$0xff]   ;;  %v1282_v15 = vld [vmem:[#allocation5 + $0x160] ss:$8 sps:$4 sm:$0xff]  }
  0x3b   :  { %v64_v13 = vld [vmem:[#allocation2 + $0x18] sm:$0xff]  ;;  %v1283_v16 = vld [vmem:[#allocation5 + $0x174] ss:$8 sps:$4 sm:$0xff]   ;;  %v1285_v18 = vld [vmem:[#allocation5 + $0x170] ss:$8 sps:$4 sm:$0xff]   ;;  %vm675_vm0 = vcmask 130048  }
  0x3c   :  { %723 = vmatpush1.bf16.msra.mxu0 %v1267_v3  ;;  %v71_v14 = vpack.c.bf16 %v64_v13, %v64_v13  ;;  %v1316_v17 = vld [vmem:[#allocation5 + $0x4] ss:$8 sps:$4 sm:$0xff]   ;;  %v1321_v20 = vld [vmem:[#allocation5] ss:$8 sps:$4 sm:$0xff]   ;;  %v1322_v21 = vld [vmem:[#allocation5 + $0x14] ss:$8 sps:$4 sm:$0xff]  }
  0x3d   :  { %724 = vmatprep.subr.bf16.mxu0 %v1268_v4  ;;  %v1286_v19 = vld [vmem:[#allocation5 + $0x184] ss:$8 sps:$4 sm:$0xff]   ;;  %679 = vmatprep.subr.bf16.mxu1 %v1316_v17  ;;  %v1327_v22 = vld [vmem:[#allocation5 + $0x10] ss:$8 sps:$4 sm:$0xff]   ;;  %v1288_v24 = vld [vmem:[#allocation5 + $0x180] ss:$8 sps:$4 sm:$0xff]  }
  0x3e   :  { %752 = vmatprep.mubr.bf16.mxu0 %v71_v14  ;;  %680 = vmatpush1.bf16.msra.mxu1 %v1321_v20  ;;  %v1328_v23 = vld [vmem:[#allocation5 + $0x24] ss:$8 sps:$4 sm:$0xff]   ;;  %v1289_v25 = vld [vmem:[#allocation5 + $0x194] ss:$8 sps:$4 sm:$0xff]   ;;  %v1333_v26 = vld [vmem:[#allocation5 + $0x20] ss:$8 sps:$4 sm:$0xff]  }
  0x3f   :  { %681 = vmatprep.subr.bf16.mxu1 %v1322_v21  ;;  %v1334_v27 = vld [vmem:[#allocation5 + $0x34] ss:$8 sps:$4 sm:$0xff]   ;;  %v1291_v28 = vld [vmem:[#allocation5 + $0x190] ss:$8 sps:$4 sm:$0xff]   ;;  %v1292_v29 = vld [vmem:[#allocation5 + $0x1a4] ss:$8 sps:$4 sm:$0xff]  }
  0x40   :  { %725 = vmatpush1.bf16.msra.mxu0 %v1270_v5  ;;  %v1339_v30 = vld [vmem:[#allocation5 + $0x30] ss:$8 sps:$4 sm:$0xff]   ;;  %v1340_v31 = vld [vmem:[#allocation5 + $0x44] ss:$8 sps:$4 sm:$0xff]   ;;  %v1294_v32 = vld [vmem:[#allocation5 + $0x1a0] ss:$8 sps:$4 sm:$0xff]  }
  0x41   :  { %726 = vmatprep.subr.bf16.mxu0 %v1271_v6  ;;  %v1295_v33 = vld [vmem:[#allocation5 + $0x1b4] ss:$8 sps:$4 sm:$0xff]   ;;  %v1345_v34 = vld [vmem:[#allocation5 + $0x40] ss:$8 sps:$4 sm:$0xff]   ;;  %v1297_v36 = vld [vmem:[#allocation5 + $0x1b0] ss:$8 sps:$4 sm:$0xff]  }
  0x42   :  { %682 = vmatpush1.bf16.msra.mxu1 %v1327_v22  ;;  %v1346_v35 = vld [vmem:[#allocation5 + $0x54] ss:$8 sps:$4 sm:$0xff]   ;;  %v1298_v37 = vld [vmem:[#allocation5 + $0x1c4] ss:$8 sps:$4 sm:$0xff]   ;;  %v1351_v38 = vld [vmem:[#allocation5 + $0x50] ss:$8 sps:$4 sm:$0xff]  }
  0x43   :  { %683 = vmatprep.subr.bf16.mxu1 %v1328_v23  ;;  %v1352_v39 = vld [vmem:[#allocation5 + $0x64] ss:$8 sps:$4 sm:$0xff]   ;;  %v1300_v40 = vld [vmem:[#allocation5 + $0x1c0] ss:$8 sps:$4 sm:$0xff]   ;;  %v1301_v41 = vld [vmem:[#allocation5 + $0x1d4] ss:$8 sps:$4 sm:$0xff]  }
  0x44   :  { %727 = vmatpush1.bf16.msra.mxu0 %v1273_v7  ;;  %v1357_v42 = vld [vmem:[#allocation5 + $0x60] ss:$8 sps:$4 sm:$0xff]   ;;  %v1358_v43 = vld [vmem:[#allocation5 + $0x74] ss:$8 sps:$4 sm:$0xff]   ;;  %v1303_v44 = vld [vmem:[#allocation5 + $0x1d0] ss:$8 sps:$4 sm:$0xff]  }
  0x45   :  { %728 = vmatprep.subr.bf16.mxu0 %v1274_v8  ;;  %v1304_v45 = vld [vmem:[#allocation5 + $0x1e4] ss:$8 sps:$4 sm:$0xff]   ;;  %v1363_v46 = vld [vmem:[#allocation5 + $0x70] ss:$8 sps:$4 sm:$0xff]   ;;  %v1306_v48 = vld [vmem:[#allocation5 + $0x1e0] ss:$8 sps:$4 sm:$0xff]  }
  0x46   :  { %684 = vmatpush1.bf16.msra.mxu1 %v1333_v26  ;;  %v1364_v47 = vld [vmem:[#allocation5 + $0x84] ss:$8 sps:$4 sm:$0xff]   ;;  %v1307_v49 = vld [vmem:[#allocation5 + $0x1f4] ss:$8 sps:$4 sm:$0xff]   ;;  %v1369_v50 = vld [vmem:[#allocation5 + $0x80] ss:$8 sps:$4 sm:$0xff]  }
  0x47   :  { %685 = vmatprep.subr.bf16.mxu1 %v1334_v27  ;;  %v1309_v51 = vld [vmem:[#allocation5 + $0x1f0] ss:$8 sps:$4 sm:$0xff]   ;;  %v1370_v52 = vld [vmem:[#allocation5 + $0x94] ss:$8 sps:$4 sm:$0xff]   ;;  %v1312_v54 = vld [vmem:[#allocation5 + $0x204] ss:$8 sps:$4 sm:$0xff]  }
  0x48   :  { %729 = vmatpush1.bf16.msra.mxu0 %v1276_v9  ;;  %v63_v53 = vld [vmem:[#allocation2 + $0x10] sm:$0xff]  ;;  %v1376_v56 = vld [vmem:[#allocation5 + $0xa4] ss:$8 sps:$4 sm:$0xff]   ;;  %v66_v58 = vld [vmem:[#allocation2 + $0x28] sm:$0xff] }
  0x49   :  { %730 = vmatprep.subr.bf16.mxu0 %v1277_v10  ;;  %v1375_v55 = vld [vmem:[#allocation5 + $0x90] ss:$8 sps:$4 sm:$0xff]   ;;  %v70_v57 = vpack.c.bf16 %v63_v53, %v63_v53  ;;  %v1310_v59 = vld [vmem:[#allocation5 + $0x200] ss:$8 sps:$4 sm:$0xff]   ;;  %v73_v60 = vpack.c.bf16 %v66_v58, %v66_v58  ;;  %v1315_v61 = vld [vmem:[#allocation5 + $0x214] ss:$8 sps:$4 sm:$0xff]  }
  0x4a   :  { %686 = vmatpush1.bf16.msra.mxu1 %v1339_v30  ;;  %v1381_v62 = vld [vmem:[#allocation5 + $0xa0] ss:$8 sps:$4 sm:$0xff]   ;;  %v1382_v63 = vld [vmem:[#allocation5 + $0xb4] ss:$8 sps:$4 sm:$0xff]   ;;  %v1313_v1 = vld [vmem:[#allocation5 + $0x210] ss:$8 sps:$4 sm:$0xff]  }
  0x4b   :  { %687 = vmatprep.subr.bf16.mxu1 %v1340_v31  ;;  %v62_v0 = vld [vmem:[#allocation2 + $0x8] sm:$0xff]  ;;  %v1320_v3 = vld [vmem:[#allocation5 + $0x224] ss:$8 sps:$4 sm:$0xff]   ;;  %v1318_v6 = vld [vmem:[#allocation5 + $0x220] ss:$8 sps:$4 sm:$0xff]  }
  0x4c   :  { %731 = vmatpush1.bf16.msra.mxu0 %v1279_v11  ;;  %v69_v2 = vpack.c.bf16 %v62_v0, %v62_v0  ;;  %v1387_v4 = vld [vmem:[#allocation5 + $0xb0] ss:$8 sps:$4 sm:$0xff]   ;;  %v1388_v5 = vld [vmem:[#allocation5 + $0xc4] ss:$8 sps:$4 sm:$0xff]   ;;  %v1326_v7 = vld [vmem:[#allocation5 + $0x234] ss:$8 sps:$4 sm:$0xff]  }
  0x4d   :  { %732 = vmatprep.subr.bf16.mxu0 %v1280_v12  ;;  %v1393_v8 = vld [vmem:[#allocation5 + $0xc0] ss:$8 sps:$4 sm:$0xff]   ;;  %v1394_v9 = vld [vmem:[#allocation5 + $0xd4] ss:$8 sps:$4 sm:$0xff]   ;;  %v1324_v10 = vld [vmem:[#allocation5 + $0x230] ss:$8 sps:$4 sm:$0xff]  }
  0x4e   :  { %688 = vmatpush1.bf16.msra.mxu1 %v1345_v34  ;;  %711 = vmatprep.mubr.bf16.mxu1 %v69_v2  ;;  %v1332_v11 = vld [vmem:[#allocation5 + $0x244] ss:$8 sps:$4 sm:$0xff]   ;;  %v1399_v12 = vld [vmem:[#allocation5 + $0xd0] ss:$8 sps:$4 sm:$0xff]   ;;  %v1330_v14 = vld [vmem:[#allocation5 + $0x240] ss:$8 sps:$4 sm:$0xff]  }
  0x4f   :  { %689 = vmatprep.subr.bf16.mxu1 %v1346_v35  ;;  %v1400_v13 = vld [vmem:[#allocation5 + $0xe4] ss:$8 sps:$4 sm:$0xff]   ;;  %v1406_v17 = vld [vmem:[#allocation5 + $0xf4] ss:$8 sps:$4 sm:$0xff]   ;;  %v1408_v20 = vld [vmem:[#allocation5 + $0xf0] ss:$8 sps:$4 sm:$0xff]  }
  0x50   :  { %733 = vmatpush1.bf16.msra.mxu0 %v1282_v15  ;;  %v1338_v15 = vld [vmem:[#allocation5 + $0x254] ss:$8 sps:$4 sm:$0xff]   ;;  %v61_v21 = vld [vmem:[#allocation2] sm:$0xff]  ;;  %v1409_v26 = vld [vmem:[#allocation7] ss:$8 sps:$4 sm:$0xff]  }
  0x51   :  { %734 = vmatprep.subr.bf16.mxu0 %v1283_v16  ;;  %v1405_v16 = vld [vmem:[#allocation5 + $0xe0] ss:$8 sps:$4 sm:$0xff]   ;;  %v1411_v22 = vld [vmem:[#allocation7 + $0x4] ss:$8 sps:$4 sm:$0xff]   ;;  %v1414_v27 = vld [vmem:[#allocation7 + $0x14] ss:$8 sps:$4 sm:$0xff]  }
  0x52   :  { %690 = vmatpush1.bf16.msra.mxu1 %v1351_v38  ;;  %v1342_v23 = vld [vmem:[#allocation5 + $0x260] ss:$8 sps:$4 sm:$0xff]   ;;  %v1417_v31 = vld [vmem:[#allocation7 + $0x24] ss:$8 sps:$4 sm:$0xff]   ;;  %v1415_v34 = vld [vmem:[#allocation7 + $0x20] ss:$8 sps:$4 sm:$0xff]  }
  0x53   :  { %691 = vmatprep.subr.bf16.mxu1 %v1352_v39  ;;  %v1412_v30 = vld [vmem:[#allocation7 + $0x10] ss:$8 sps:$4 sm:$0xff]   ;;  %v1420_v35 = vld [vmem:[#allocation7 + $0x34] ss:$8 sps:$4 sm:$0xff]   ;;  %v1423_v39 = vld [vmem:[#allocation7 + $0x44] ss:$8 sps:$4 sm:$0xff]  }
  0x54   :  { %735 = vmatpush1.bf16.msra.mxu0 %v1285_v18  ;;  %v1336_v18 = vld [vmem:[#allocation5 + $0x250] ss:$8 sps:$4 sm:$0xff]   ;;  %v1418_v38 = vld [vmem:[#allocation7 + $0x30] ss:$8 sps:$4 sm:$0xff]   ;;  %v1392_v53 = vld [vmem:[#allocation5 + $0x2e4] ss:$8 sps:$4 sm:$0xff]  }
  0x55   :  { %736 = vmatprep.subr.bf16.mxu0 %v1286_v19  ;;  %v1344_v19 = vld [vmem:[#allocation5 + $0x264] ss:$8 sps:$4 sm:$0xff]   ;;  %v1433_v58 = vld [vmem:[#allocation7 + $0x80] ss:$8 sps:$4 sm:$0xff]   ;;  %v1402_v2 = vld [vmem:[#allocation5 + $0x300] ss:$8 sps:$4 sm:$0xff]  }
  0x56   :  { %692 = vmatpush1.bf16.msra.mxu1 %v1357_v42  ;;  %v1421_v42 = vld [vmem:[#allocation7 + $0x40] ss:$8 sps:$4 sm:$0xff]  }
  0x57   :  { %693 = vmatprep.subr.bf16.mxu1 %v1358_v43  ;;  %v1426_v43 = vld [vmem:[#allocation7 + $0x54] ss:$8 sps:$4 sm:$0xff]  }
  0x58   :  { %737 = vmatpush1.bf16.msra.mxu0 %v1288_v24  ;;  %v1350_v24 = vld [vmem:[#allocation5 + $0x274] ss:$8 sps:$4 sm:$0xff]  }
  0x59   :  { %738 = vmatprep.subr.bf16.mxu0 %v1289_v25  ;;  %v68_v25 = vpack.c.bf16 %v61_v21, %v61_v21  ;;  %v175_v21 = vlaneseq }
  0x5a   :  { %694 = vmatpush1.bf16.msra.mxu1 %v1363_v46  ;;  %v1424_v46 = vld [vmem:[#allocation7 + $0x50] ss:$8 sps:$4 sm:$0xff]  }
  0x5b   :  { %695 = vmatprep.subr.bf16.mxu1 %v1364_v47  ;;  %v1429_v47 = vld [vmem:[#allocation7 + $0x64] ss:$8 sps:$4 sm:$0xff]  }
  0x5c   :  { %739 = vmatpush1.bf16.msra.mxu0 %v1291_v28  ;;  %v1348_v28 = vld [vmem:[#allocation5 + $0x270] ss:$8 sps:$4 sm:$0xff]  }
  0x5d   :  { %740 = vmatprep.subr.bf16.mxu0 %v1292_v29  ;;  %v1356_v29 = vld [vmem:[#allocation5 + $0x284] ss:$8 sps:$4 sm:$0xff]  }
  0x5e   :  { %696 = vmatpush1.bf16.msra.mxu1 %v1369_v50  ;;  %v1427_v50 = vld [vmem:[#allocation7 + $0x60] ss:$8 sps:$4 sm:$0xff]  }
  0x5f   :  { %697 = vmatprep.subr.bf16.mxu1 %v1370_v52  ;;  %v1384_v52 = vld [vmem:[#allocation5 + $0x2d0] ss:$8 sps:$4 sm:$0xff]  }
  0x60   :  { %741 = vmatpush1.bf16.msra.mxu0 %v1294_v32  ;;  %v1354_v32 = vld [vmem:[#allocation5 + $0x280] ss:$8 sps:$4 sm:$0xff]  }
  0x61   :  { %742 = vmatprep.subr.bf16.mxu0 %v1295_v33  ;;  %v1362_v33 = vld [vmem:[#allocation5 + $0x294] ss:$8 sps:$4 sm:$0xff]  }
  0x62   :  { %698 = vmatpush1.bf16.msra.mxu1 %v1375_v55  ;;  %v1435_v55 = vld [vmem:[#allocation7 + $0x84] ss:$8 sps:$4 sm:$0xff]  }
  0x63   :  { %699 = vmatprep.subr.bf16.mxu1 %v1376_v56  ;;  %v1390_v56 = vld [vmem:[#allocation5 + $0x2e0] ss:$8 sps:$4 sm:$0xff]  }
  0x64   :  { %743 = vmatpush1.bf16.msra.mxu0 %v1297_v36  ;;  %v1360_v36 = vld [vmem:[#allocation5 + $0x290] ss:$8 sps:$4 sm:$0xff]  }
  0x65   :  { %744 = vmatprep.subr.bf16.mxu0 %v1298_v37  ;;  %v1368_v37 = vld [vmem:[#allocation5 + $0x2a4] ss:$8 sps:$4 sm:$0xff]  }
  0x66   :  { %700 = vmatpush1.bf16.msra.mxu1 %v1381_v62  ;;  %v1404_v62 = vld [vmem:[#allocation5 + $0x304] ss:$8 sps:$4 sm:$0xff]  }
  0x67   :  { %701 = vmatprep.subr.bf16.mxu1 %v1382_v63  ;;  %v1436_v63 = vld [vmem:[#allocation7 + $0x90] ss:$8 sps:$4 sm:$0xff]  }
  0x68   :  { %745 = vmatpush1.bf16.msra.mxu0 %v1300_v40  ;;  %v1366_v40 = vld [vmem:[#allocation5 + $0x2a0] ss:$8 sps:$4 sm:$0xff]  }
  0x69   :  { %746 = vmatprep.subr.bf16.mxu0 %v1301_v41  ;;  %v1374_v41 = vld [vmem:[#allocation5 + $0x2b4] ss:$8 sps:$4 sm:$0xff]  }
  0x6a   :  { %702 = vmatpush1.bf16.msra.mxu1 %v1387_v4  ;;  %v1444_v4 = vld [vmem:[#allocation7 + $0xb4] ss:$8 sps:$4 sm:$0xff]  }
  0x6b   :  { %703 = vmatprep.subr.bf16.mxu1 %v1388_v5  ;;  %v1556_v5 = vmov 0  }
  0x6c   :  { %747 = vmatpush1.bf16.msra.mxu0 %v1303_v44  ;;  %v1372_v44 = vld [vmem:[#allocation5 + $0x2b0] ss:$8 sps:$4 sm:$0xff]  }
  0x6d   :  { %748 = vmatprep.subr.bf16.mxu0 %v1304_v45  ;;  %v1380_v45 = vld [vmem:[#allocation5 + $0x2c4] ss:$8 sps:$4 sm:$0xff]  }
  0x6e   :  { %704 = vmatpush1.bf16.msra.mxu1 %v1393_v8  ;;  %v67_v8 = vld [vmem:[#allocation2 + $0x30] sm:$0xff] }
  0x6f   :  { %705 = vmatprep.subr.bf16.mxu1 %v1394_v9  ;;  %v1445_v9 = vld [vmem:[#allocation7 + $0xc0] ss:$8 sps:$4 sm:$0xff]  }
  0x70   :  { %749 = vmatpush1.bf16.msra.mxu0 %v1306_v48  ;;  %v1378_v48 = vld [vmem:[#allocation5 + $0x2c0] ss:$8 sps:$4 sm:$0xff]  }
  0x71   :  { %750 = vmatprep.subr.bf16.mxu0 %v1307_v49  ;;  %v1386_v49 = vld [vmem:[#allocation5 + $0x2d4] ss:$8 sps:$4 sm:$0xff]  }
  0x72   :  { %706 = vmatpush1.bf16.msra.mxu1 %v1399_v12  ;;  %v1450_v12 = vld [vmem:[#allocation7 + $0xd4] ss:$8 sps:$4 sm:$0xff]  }
  0x73   :  { %707 = vmatprep.subr.bf16.mxu1 %v1400_v13  ;;  %v1453_v13 = vld [vmem:[#allocation7 + $0xe4] ss:$8 sps:$4 sm:$0xff]  }
  0x74   :  { %751 = vmatpush1.bf16.msra.mxu0 %v1309_v51  ;;  %v1432_v51 = vld [vmem:[#allocation7 + $0x74] ss:$8 sps:$4 sm:$0xff]  }
  0x75   :  { %761 = vmatprep.subr.bf16.mxu0 %v1312_v54  ;;  %v1430_v54 = vld [vmem:[#allocation7 + $0x70] ss:$8 sps:$4 sm:$0xff]  }
  0x76   :  { %708 = vmatpush1.bf16.msra.mxu1 %v1405_v16  ;;  %v1454_v16 = vld [vmem:[#allocation7 + $0xf0] ss:$8 sps:$4 sm:$0xff]  }
  0x77   :  { %753 = vmatmul.mubr.bf16.vlgmr.msra.gmra.mrb[0].mxu0 %v70_v57  ;;  %709 = vmatprep.subr.bf16.mxu1 %v1406_v17  ;;  %v1398_v57 = vld [vmem:[#allocation5 + $0x2f4] ss:$8 sps:$4 sm:$0xff]  }
  0x78   :  { %762 = vmatpush1.bf16.msra.mxu0 %v1310_v59  ;;  %793 = vmatprep.mubr.bf16.mxu0 %v73_v60  ;;  %v1438_v59 = vld [vmem:[#allocation7 + $0x94] ss:$8 sps:$4 sm:$0xff]   ;;  %v1396_v60 = vld [vmem:[#allocation5 + $0x2f0] ss:$8 sps:$4 sm:$0xff]  }
  0x79   :  { %763 = vmatprep.subr.bf16.mxu0 %v1315_v61  ;;  %v65_v61 = vld [vmem:[#allocation2 + $0x20] sm:$0xff] }
  0x7a   :  { %710 = vmatpush1.bf16.msra.mxu1 %v1408_v20  ;;  %v72_v0 = vpack.c.bf16 %v65_v61, %v65_v61 }
  0x7b   :  { %1051 = vmatprep.subr.bf16.mxu1 %v1411_v22  ;;  %v176_v22 = vshrl.u32 %v175_v21, 7 }
  0x7c   :  { %764 = vmatpush1.bf16.msra.mxu0 %v1313_v1  ;;  %v1441_v1 = vld [vmem:[#allocation7 + $0xa4] ss:$8 sps:$4 sm:$0xff]  }
  0x7d   :  { %765 = vmatprep.subr.bf16.mxu0 %v1320_v3  ;;  %712 = vmatmul.mubr.bf16.vlgmr.msra.gmra.mrb[0].mxu1 %v68_v25  ;;  %v1439_v3 = vld [vmem:[#allocation7 + $0xa0] ss:$8 sps:$4 sm:$0xff]   ;;  %v181_v25 = vsub.s32 1, %v176_v22 }
  0x7e   :  { %1052 = vmatpush1.bf16.msra.mxu1 %v1409_v26 }
  0x7f   :  { %1053 = vmatprep.subr.bf16.mxu1 %v1414_v27 }
  0x80   :  { %766 = vmatpush1.bf16.msra.mxu0 %v1318_v6  ;;  %v1442_v6 = vld [vmem:[#allocation7 + $0xb0] ss:$8 sps:$4 sm:$0xff]  }
  0x81   :  { %767 = vmatprep.subr.bf16.mxu0 %v1326_v7  ;;  %v1447_v7 = vld [vmem:[#allocation7 + $0xc4] ss:$8 sps:$4 sm:$0xff]  }
  0x82   :  { %1054 = vmatpush1.bf16.msra.mxu1 %v1412_v30 }
  0x83   :  { %1055 = vmatprep.subr.bf16.mxu1 %v1417_v31 }
  0x84   :  { %768 = vmatpush1.bf16.msra.mxu0 %v1324_v10  ;;  %v74_v10 = vpack.c.bf16 %v67_v8, %v67_v8 }
  0x85   :  { %769 = vmatprep.subr.bf16.mxu0 %v1332_v11  ;;  %v1448_v11 = vld [vmem:[#allocation7 + $0xd0] ss:$8 sps:$4 sm:$0xff]  }
  0x86   :  { %1056 = vmatpush1.bf16.msra.mxu1 %v1415_v34 }
  0x87   :  { %1057 = vmatprep.subr.bf16.mxu1 %v1420_v35 }
  0x88   :  { %770 = vmatpush1.bf16.msra.mxu0 %v1330_v14  ;;  %v1451_v14 = vld [vmem:[#allocation7 + $0xe0] ss:$8 sps:$4 sm:$0xff]  }
  0x89   :  { %771 = vmatprep.subr.bf16.mxu0 %v1338_v15  ;;  %v1456_v15 = vld [vmem:[#allocation7 + $0xf4] ss:$8 sps:$4 sm:$0xff]  }
  0x8a   :  { %1058 = vmatpush1.bf16.msra.mxu1 %v1418_v38 }
  0x8b   :  { %1059 = vmatprep.subr.bf16.mxu1 %v1423_v39 }
  0x8c   :  { %772 = vmatpush1.bf16.msra.mxu0 %v1336_v18 }
  0x8d   :  { %773 = vmatprep.subr.bf16.mxu0 %v1344_v19 }
  0x8e   :  { %1060 = vmatpush1.bf16.msra.mxu1 %v1421_v42 }
  0x8f   :  { %1061 = vmatprep.subr.bf16.mxu1 %v1426_v43 }
  0x90   :  { %774 = vmatpush1.bf16.msra.mxu0 %v1342_v23  ;;  %v177_v23 = vsub.s32 0, %v176_v22 }
  0x91   :  { %775 = vmatprep.subr.bf16.mxu0 %v1350_v24  ;;  %v173_v24 = vld [vmem:[%s1650_s2] sm:$0x3]  ;;  %s1557_s2 = smov [#allocation8]  }
  0x92   :  { %1062 = vmatpush1.bf16.msra.mxu1 %v1424_v46  ;;  %v178_v26 = vrot.slane %v173_v24, %v177_v23  ;;  %v182_v27 = vrot.slane %v173_v24, %v181_v25  ;;  %s1102_s7 = sshll.u32 %s1557_s2, 4  ;;  %s1103_s7 = int_to_ptr.vmem [resolvable:$true] %s1102_s7 }
  0x93   :  { %1063 = vmatprep.subr.bf16.mxu1 %v1429_v47  ;;  %s1523_s8 = scalar_lea.vmem %s1103_s7, 256  ;;  %p1528_p11 = scmp.lt.s32.totalorder %s1103_s7, %s1103_s7 }
  0x94   :  { %776 = vmatpush1.bf16.msra.mxu0 %v1348_v28  ;;  %p1524_p10 = scmp.ne.s32.totalorder %s1103_s7, %s1523_s8  ;;  %p1529_p12 = scmp.lt.s32.totalorder %s1523_s8, %s1523_s8 }
  0x95   :  { %777 = vmatprep.subr.bf16.mxu0 %v1356_v29 }
  0x96   :  { %1064 = vmatpush1.bf16.msra.mxu1 %v1427_v50  ;;  %p1530_p13 = por %p1529_p12, %p1528_p11 }
  0x97   :  { %1065 = vmatprep.subr.bf16.mxu1 %v1432_v51 }
  0x98   :  { %778 = vmatpush1.bf16.msra.mxu0 %v1354_v32  ;;  %p1531_p0 = pnand %p1530_p13, %p1524_p10 }
  0x99   :  { %779 = vmatprep.subr.bf16.mxu0 %v1362_v33 }
  0x9a   :  { %1066 = vmatpush1.bf16.msra.mxu1 %v1430_v54 }
  0x9b   :  { %1067 = vmatprep.subr.bf16.mxu1 %v1435_v55 }
  0x9c   :  { %780 = vmatpush1.bf16.msra.mxu0 %v1360_v36 }
  0x9d   :  { %781 = vmatprep.subr.bf16.mxu0 %v1368_v37 }
  0x9e   :  { %1068 = vmatpush1.bf16.msra.mxu1 %v1433_v58 }
  0x9f   :  { %1069 = vmatprep.subr.bf16.mxu1 %v1438_v59 }
  0xa0   :  { %782 = vmatpush1.bf16.msra.mxu0 %v1366_v40  ;;  %v879_v40 = vld [vmem:[%s1652_s4] sm:$0x3] }
  0xa1   :  { %783 = vmatprep.subr.bf16.mxu0 %v1374_v41  ;;  %v884_v41 = vrot.slane %v879_v40, %v177_v23  ;;  %v888_v42 = vrot.slane %v879_v40, %v181_v25 }
  0xa2   :  { %1070 = vmatpush1.bf16.msra.mxu1 %v1436_v63 }
  0xa3   :  { %1071 = vmatprep.subr.bf16.mxu1 %v1441_v1 }
  0xa4   :  { %784 = vmatpush1.bf16.msra.mxu0 %v1372_v44 }
  0xa5   :  { %785 = vmatprep.subr.bf16.mxu0 %v1380_v45 }
  0xa6   :  { %1072 = vmatpush1.bf16.msra.mxu1 %v1439_v3 }
  0xa7   :  { %1073 = vmatprep.subr.bf16.mxu1 %v1444_v4 }
  0xa8   :  { %786 = vmatpush1.bf16.msra.mxu0 %v1378_v48 }
  0xa9   :  { %787 = vmatprep.subr.bf16.mxu0 %v1386_v49 }
  0xaa   :  { %1074 = vmatpush1.bf16.msra.mxu1 %v1442_v6 }
  0xab   :  { %1075 = vmatprep.subr.bf16.mxu1 %v1447_v7 }
  0xac   :  { %788 = vmatpush1.bf16.msra.mxu0 %v1384_v52 }
  0xad   :  { %789 = vmatprep.subr.bf16.mxu0 %v1392_v53 }
  0xae   :  { %1076 = vmatpush1.bf16.msra.mxu1 %v1445_v9 }
  0xaf   :  { %1077 = vmatprep.subr.bf16.mxu1 %v1450_v12 }
  0xb0   :  { %790 = vmatpush1.bf16.msra.mxu0 %v1390_v56 }
  0xb1   :  { %791 = vmatprep.subr.bf16.mxu0 %v1398_v57 }
  0xb2   :  { %1078 = vmatpush1.bf16.msra.mxu1 %v1448_v11 }
  0xb3   :  { %1079 = vmatprep.subr.bf16.mxu1 %v1453_v13 }
  0xb4   :  { %792 = vmatpush1.bf16.msra.mxu0 %v1396_v60 }
  0xb5   :  { %802 = vmatprep.subr.bf16.mxu0 %v1404_v62 }
  0xb6   :  { %1080 = vmatpush1.bf16.msra.mxu1 %v1451_v14 }
  0xb7   :  { %794 = vmatmul.mubr.bf16.vlgmr.msra.gmra.mrb[0].mxu0 %v72_v0  ;;  %1081 = vmatprep.subr.bf16.mxu1 %v1456_v15 }
  0xb8   :  { %803 = vmatpush1.bf16.msra.mxu0 %v1402_v2  ;;  %834 = vmatprep.mubr.bf16.mxu0 %v1556_v5 }
  0xba   :  { %1082 = vmatpush1.bf16.msra.mxu1 %v1454_v16 }
  0xc3   :  { %1210 = vmatmul.mubr.msk.bf16.vlgmr.msra.gmra.mrb[0].mxu0 %vm675_vm0, %v74_v10 }
 0x150   :  { %v713_v17 = vpop.f32.mrb[0].mxu1 }
 0x151   :  { %v715_v18 = vpop.f32.mrb[1].mxu1  ;;  %v714_v28 = vadd.f32 %v713_v17, %v178_v26 }
 0x152   :  { %v717_v19 = vpop.f32.mrb[2].mxu1  ;;  %v716_v29 = vadd.f32 %v715_v18, %v182_v27 }
 0x153   :  { %v718_v20 = vpop.f32.mrb[3].mxu1 }
 0x196   :  { %v836_v30 = vpop.f32.mrb[0].mxu0 }
 0x197   :  { %v1244_v31 = vadd.f32 %v836_v30, %v714_v28  ;;  %v838_v32 = vpop.f32.mrb[1].mxu0 }
 0x198   :  { %v1246_v33 = vadd.f32 %v838_v32, %v716_v29  ;;  %v840_v34 = vpop.f32.mrb[2].mxu0 }
 0x199   :  { %v843_v35 = vmax.f32 %v1244_v31, 0.0  ;;  %v841_v36 = vpop.f32.mrb[3].mxu0 }
 0x19a   :  { %v844_v37 = vmax.f32 %v1246_v33, 0.0 }
 0x19b   :  { %v845_v39 = vpack.c.bf16 %v843_v35, %v843_v35 }
 0x19c   :  { %v846_v38 = vpack.c.bf16 %v844_v37, %v844_v37 }
 0x19e   :  { %1083 = vmatprep.mubr.bf16.mxu1 %v846_v38 }
 0x19f   :  { %1084 = vmatmul.mubr.bf16.vlgmr.msra.gmra.mrb[4].mxu1 %v845_v39 }
 0x272   :  { %v1085_v43 = vpop.f32.mrb[4].mxu1 }
 0x273   :  { %v1086_v44 = vadd.f32 %v1085_v43, %v884_v41  ;;  %v1087_v45 = vpop.f32.mrb[5].mxu1 }
 0x274   :  { %v1088_v46 = vadd.f32 %v1087_v45, %v888_v42  ;;  %v1089_v47 = vpop.f32.mrb[6].mxu1 }
 0x275   :  { %v1092_v48 = vmax.f32 %v1086_v44, 0.0  ;;  %v1090_v49 = vpop.f32.mrb[7].mxu1 }
 0x276   :  { %v1093_v50 = vmax.f32 %v1088_v46, 0.0 }
 0x277   :  { %1094 = vst [vmem:[#allocation8] sm:$0xff] %v1092_v48 }
 0x278   :  { %1095 = vst [vmem:[#allocation8 + $0x8] sm:$0xff] %v1093_v50 }
 0x279   :  { %1534 = shalt.err (!%p1531_p0)
}
 0x27a   :  { %s1535_s10 = scalar_lea.hbm %s1653_s5, 256 }
 0x27b   :  { %p1536_p1 = scmp.ne.s32.totalorder %s1653_s5, %s1535_s10  ;;  %p1539_p2 = scmp.lt.u32.totalorder %s1535_s10, %s1653_s5 }
 0x27d   :  { %p1541_p3 = pnand %p1539_p2, %p1536_p1 }
 0x27f   :  { %1544 = shalt.err (!%p1541_p3)
}
 0x280   :  { %1105 = dma.vmem_to_hbm [thread:$0]  %s1103_s7, 256, %s1653_s5, [#allocation4]  }
 0x281   :  { %1549 = dma.done.wait [#allocation4], 256  }
 0x282   :  { %1550 = vsyncadd [#allocation4], 4294967040 }
 0x283   :  { %1109 = vsyncpa [#allocation3], 1 }
 0x284   :  { %1110 = vsyncpa [#allocation6], 1 }
 0x285   :  { %1111 = vsyncpa [#allocation4], 1 }

</bundles_post_ra>
